<compile_context>
chip_gen: v7x
topology: tpu7x:2x2x1
jax: 0.10.0
libtpu: 0.0.40
codegen_flags: <defaults>
</compile_context>

<pallas_src>
import functools

import numpy as np
import jax
import jax.numpy as jnp
from jax import lax
from jax.experimental import pallas as pl
from jax.experimental.pallas import tpu as pltpu


def _l2_normalize(x):
    # F.normalize(x, dim=-1) == x / max(||x||, 1e-12) == x * rsqrt(max(||x||^2, 1e-24))
    s = jnp.maximum(jnp.sum(x * x, axis=-1, keepdims=True), 1e-24)
    y = lax.rsqrt(s)
    # One Newton step so the result matches sqrt+divide to ~1 ulp even if the
    # EUP rsqrt is approximate (exp(alpha*cos) amplifies cos errors by alpha).
    y = y * (1.5 - 0.5 * s * y * y)
    return x * y


def _qdl_kernel(x_rows_ref, x_cols_ref, gid_rows_ref, gid_cols_ref, out_ref,
                *, mrg, alpha, lamda, lamda_int, inv_bs):
    tm = x_rows_ref.shape[0]
    p = x_cols_ref.shape[0]

    xr = _l2_normalize(x_rows_ref[...].astype(jnp.float32))   # (TM, D)
    xc = _l2_normalize(x_cols_ref[...].astype(jnp.float32))   # (P,  D)

    # cos tile (TM, P): contract the feature dim of both operands directly
    # (no explicit transpose before the MXU).
    cos = lax.dot_general(xr, xc,
                          dimension_numbers=(((1,), (1,)), ((), ())),
                          preferred_element_type=jnp.float32)

    # Block-diagonal-minus-eye negative mask, synthesized from int32 group ids.
    gid_r = gid_rows_ref[...]                                  # (TM, 1) int32
    gid_c = gid_cols_ref[...]                                  # (1,  P) int32
    r0 = pl.program_id(0) * tm
    row_idx = r0 + lax.broadcasted_iota(jnp.int32, (tm, p), 0)
    col_idx = lax.broadcasted_iota(jnp.int32, (tm, p), 1)
    is_neg = (gid_r == gid_c) & (row_idx != col_idx)

    # NOTE: naive form matches the reference exactly; requires alpha*(1+mrg)
    # < ~88 to avoid f32 exp overflow (true for alpha=32, mrg=0.1).
    zeros = jnp.zeros_like(cos)
    neg_exp = jnp.exp(alpha * (cos + mrg))
    n_sim_sum = jnp.where(is_neg, neg_exp, zeros)
    focal = jnp.where(is_neg, cos, zeros)

    base = 1.0 + focal
    if lamda_int is not None:                   # small integer exponent ->
        pw = jnp.ones_like(base) if lamda_int == 0 else base
        for _ in range(max(lamda_int - 1, 0)):  # explicit VPU multiplies
            pw = pw * base
    else:                                       # general float exponent (EUP)
        pw = jnp.power(base, lamda)

    term = pw * jnp.log(1.0 + n_sim_sum)

    # Per-row-tile partial sum, written lane-dense so the row-tile grid axis
    # stays fully parallel (v7x megacore); reduced to a scalar in JAX.
    tile_sum = jnp.sum(term) * inv_bs
    out_ref[...] = jnp.full((8, 128), tile_sum, dtype=jnp.float32)


def _round_up(a, b):
    return (a + b - 1) // b * b


def query_diverse_loss(x, group_ids, *, mrg, alpha, lamda):
    """x: (bs, d) features. group_ids: (bs,) int32; rows sharing a non-negative
    id form a group (negative = no group, remapped to unique negatives)."""
    bs, d = x.shape

    # Row-tile size: 256 for large bs (fills the 2x256 MXU on v6e/v7x),
    # otherwise one 8-aligned tile.  D is padded to a lane multiple — zero
    # columns change neither norms nor dot products.
    tm = 256 if bs >= 256 else _round_up(bs, 8)
    p = _round_up(bs, tm)
    dp = _round_up(d, 128)
    nt = p // tm
    # TODO(synk): for very large bs, also tile the column axis and exploit the
    # block-diagonal structure (per-group Gram blocks via PrefetchScalarGridSpec
    # group offsets) so only O(sum g_i^2 * D) MXU work is done.

    x_p = jnp.zeros((p, dp), x.dtype).at[:bs, :d].set(x)

    gid = jnp.asarray(group_ids, jnp.int32)
    uniq_neg = -(jnp.arange(p, dtype=jnp.int32) + 1)   # unique "no group" ids
    gid_p = uniq_neg.at[:bs].set(jnp.where(gid >= 0, gid, uniq_neg[:bs]))
    gid_rows = gid_p.reshape(p, 1)
    gid_cols = gid_p.reshape(1, p)

    lam = float(lamda)
    lamda_int = int(lam) if (lam.is_integer() and 0.0 <= lam <= 8.0) else None

    kernel = functools.partial(
        _qdl_kernel, mrg=float(mrg), alpha=float(alpha), lamda=lam,
        lamda_int=lamda_int, inv_bs=1.0 / bs)

    out = pl.pallas_call(
        kernel,
        out_shape=jax.ShapeDtypeStruct((nt * 8, 128), jnp.float32),
        grid_spec=pltpu.PrefetchScalarGridSpec(
            num_scalar_prefetch=0,
            grid=(nt,),
            in_specs=[
                pl.BlockSpec((tm, dp), lambda i: (i, 0)),   # row tile of x
                pl.BlockSpec((p, dp), lambda i: (0, 0)),    # all rows (cos columns)
                pl.BlockSpec((tm, 1), lambda i: (i, 0)),    # row-tile group ids
                pl.BlockSpec((1, p), lambda i: (0, 0)),     # column group ids
            ],
            out_specs=pl.BlockSpec((8, 128), lambda i: (i, 0)),
        ),
        compiler_params=pltpu.CompilerParams(
            dimension_semantics=("parallel",)),
    )(x_p, x_p, gid_rows, gid_cols)

    # one scalar per row tile (replicated over its (8, 128) output block)
    partials = out.reshape(nt, 8, 128)[:, 0, 0]
    return jnp.sum(partials)


def group_ids_from_label_dict(bs, label_dict):
    """Mirror of the module's N_one_hot construction: rows label[0]..label[-1]
    of each entry share a group; uncovered rows get unique negative ids."""
    gid = -(np.arange(bs, dtype=np.int32) + 1)
    for g, (_, label) in enumerate(label_dict.items()):
        gid[label[0]:label[-1] + 1] = g
    return jnp.asarray(gid)


def reference(x, label_dict, *, mrg, alpha, lamda):
    """Pure-JAX mirror of the PyTorch module (dense-mask path)."""
    bs = x.shape[0]
    xn = x / jnp.maximum(jnp.sqrt(jnp.sum(x * x, -1, keepdims=True)), 1e-12)
    cos = xn @ xn.T
    m = jnp.zeros((bs, bs), jnp.float32)
    for _, label in label_dict.items():
        lo, hi = label[0], label[-1] + 1
        m = m.at[lo:hi, lo:hi].set(1.0)
    m = m - jnp.eye(bs, dtype=jnp.float32)
    neg_exp = jnp.exp(alpha * (cos + mrg))
    n_sim = jnp.where(m == 1.0, neg_exp, 0.0)
    focal = jnp.where(m == 1.0, cos, 0.0)
    return jnp.sum((1.0 + focal) ** lamda * jnp.log(1.0 + n_sim)) / bs


if __name__ == "__main__":
    # config['neg_factor'] = [mrg, alpha, lamda]
    mrg, alpha, lamda = 0.1, 32.0, 2.0

    bs, d = 8, 32
    key = jax.random.PRNGKey(0)
    x = jax.random.normal(key, (bs, d), dtype=jnp.float32)

    # label_dict: contiguous index groups, as in the PyTorch module
    label_dict = {0: [0, 1, 2, 3], 1: [4, 5, 6, 7]}
    gids = group_ids_from_label_dict(bs, label_dict)

    loss = query_diverse_loss(x, gids, mrg=mrg, alpha=alpha, lamda=lamda)
    loss = jax.block_until_ready(loss)

    ref = reference(x, label_dict, mrg=mrg, alpha=alpha, lamda=lamda)
    assert jnp.allclose(loss, ref, rtol=1e-4, atol=1e-4), (loss, ref)

    print("KERNEL_OK")
</pallas_src>

<mosaic_0001>
module attributes {stable_mosaic.version = 11 : i64} {
  func.func @_qdl_kernel(%arg0: i32, %arg1: memref<8x128xf32, #tpu.memory_space<vmem>>, %arg2: memref<8x128xf32, #tpu.memory_space<vmem>>, %arg3: memref<8x1xi32, #tpu.memory_space<vmem>>, %arg4: memref<1x8xi32, #tpu.memory_space<vmem>>, %arg5: memref<8x128xf32, #tpu.memory_space<vmem>>) attributes {dimension_semantics = [#tpu.dimension_semantics<parallel>], iteration_bounds = array<i64: 1>, scalar_prefetch = 0 : i64, scratch_operands = 0 : i64, tpu.core_type = #tpu.core_type<tc>, window_params = [{transform_indices = @transform_0, window_bounds = array<i64: 8, 128>}, {pipeline_mode = #tpu.pipeline_mode<synchronous>, transform_indices = @transform_1, window_bounds = array<i64: 8, 128>}, {transform_indices = @transform_2, window_bounds = array<i64: 8, 1>}, {pipeline_mode = #tpu.pipeline_mode<synchronous>, transform_indices = @transform_3, window_bounds = array<i64: 1, 8>}, {transform_indices = @transform_4, window_bounds = array<i64: 8, 128>}]} {
    %c0 = arith.constant 0 : index
    %c0_0 = arith.constant 0 : index
    %0 = vector.load %arg1[%c0, %c0_0] : memref<8x128xf32, #tpu.memory_space<vmem>>, vector<8x128xf32>
    %1 = arith.mulf %0, %0 : vector<8x128xf32>
    %cst = arith.constant dense<0.000000e+00> : vector<8xf32>
    %2 = vector.multi_reduction <add>, %1, %cst [1] : vector<8x128xf32> to vector<8xf32>
    %3 = vector.shape_cast %2 : vector<8xf32> to vector<8x1xf32>
    %cst_1 = arith.constant 1.000000e-24 : f32
    %4 = vector.broadcast %cst_1 : f32 to vector<8x1xf32>
    %5 = arith.maximumf %3, %4 : vector<8x1xf32>
    %6 = math.rsqrt %5 : vector<8x1xf32>
    %cst_2 = arith.constant 5.000000e-01 : f32
    %7 = vector.broadcast %cst_2 : f32 to vector<8x1xf32>
    %8 = arith.mulf %7, %5 : vector<8x1xf32>
    %9 = arith.mulf %8, %6 : vector<8x1xf32>
    %10 = arith.mulf %9, %6 : vector<8x1xf32>
    %cst_3 = arith.constant 1.500000e+00 : f32
    %11 = vector.broadcast %cst_3 : f32 to vector<8x1xf32>
    %12 = arith.subf %11, %10 : vector<8x1xf32>
    %13 = arith.mulf %6, %12 : vector<8x1xf32>
    %14 = vector.broadcast %13 : vector<8x1xf32> to vector<8x128xf32>
    %15 = arith.mulf %0, %14 : vector<8x128xf32>
    %c0_4 = arith.constant 0 : index
    %c0_5 = arith.constant 0 : index
    %16 = vector.load %arg2[%c0_4, %c0_5] : memref<8x128xf32, #tpu.memory_space<vmem>>, vector<8x128xf32>
    %17 = arith.mulf %16, %16 : vector<8x128xf32>
    %cst_6 = arith.constant dense<0.000000e+00> : vector<8xf32>
    %18 = vector.multi_reduction <add>, %17, %cst_6 [1] : vector<8x128xf32> to vector<8xf32>
    %19 = vector.shape_cast %18 : vector<8xf32> to vector<8x1xf32>
    %cst_7 = arith.constant 1.000000e-24 : f32
    %20 = vector.broadcast %cst_7 : f32 to vector<8x1xf32>
    %21 = arith.maximumf %19, %20 : vector<8x1xf32>
    %22 = math.rsqrt %21 : vector<8x1xf32>
    %cst_8 = arith.constant 5.000000e-01 : f32
    %23 = vector.broadcast %cst_8 : f32 to vector<8x1xf32>
    %24 = arith.mulf %23, %21 : vector<8x1xf32>
    %25 = arith.mulf %24, %22 : vector<8x1xf32>
    %26 = arith.mulf %25, %22 : vector<8x1xf32>
    %cst_9 = arith.constant 1.500000e+00 : f32
    %27 = vector.broadcast %cst_9 : f32 to vector<8x1xf32>
    %28 = arith.subf %27, %26 : vector<8x1xf32>
    %29 = arith.mulf %22, %28 : vector<8x1xf32>
    %30 = vector.broadcast %29 : vector<8x1xf32> to vector<8x128xf32>
    %31 = arith.mulf %16, %30 : vector<8x128xf32>
    %cst_10 = arith.constant dense<0.000000e+00> : vector<8x8xf32>
    %32 = tpu.matmul %15, %31, %cst_10 {dimension_numbers = #tpu.dot_dimension_numbers<[1], [1], [0], [0], [0, 0, 1, 0], [], []>} : vector<8x128xf32>, vector<8x128xf32>, vector<8x8xf32> -> vector<8x8xf32>
    %c0_11 = arith.constant 0 : index
    %c0_12 = arith.constant 0 : index
    %33 = vector.load %arg3[%c0_11, %c0_12] : memref<8x1xi32, #tpu.memory_space<vmem>>, vector<8x1xi32>
    %c0_13 = arith.constant 0 : index
    %c0_14 = arith.constant 0 : index
    %34 = vector.load %arg4[%c0_13, %c0_14] : memref<1x8xi32, #tpu.memory_space<vmem>>, vector<1x8xi32>
    %c8_i32 = arith.constant 8 : i32
    %35 = arith.muli %arg0, %c8_i32 : i32
    %36 = tpu.iota {dimensions = array<i32: 0>} : vector<8x8xi32>
    %37 = vector.broadcast %35 : i32 to vector<8x8xi32>
    %38 = arith.addi %37, %36 : vector<8x8xi32>
    %39 = tpu.iota {dimensions = array<i32: 1>} : vector<8x8xi32>
    %40 = vector.broadcast %33 : vector<8x1xi32> to vector<8x8xi32>
    %41 = vector.broadcast %34 : vector<1x8xi32> to vector<8x8xi32>
    %42 = arith.cmpi eq, %40, %41 : vector<8x8xi32>
    %43 = arith.cmpi ne, %38, %39 : vector<8x8xi32>
    %44 = arith.andi %42, %43 : vector<8x8xi1>
    %cst_15 = arith.constant 0.000000e+00 : f32
    %45 = vector.broadcast %cst_15 : f32 to vector<8x8xf32>
    %cst_16 = arith.constant 1.000000e-01 : f32
    %46 = vector.broadcast %cst_16 : f32 to vector<8x8xf32>
    %47 = arith.addf %32, %46 : vector<8x8xf32>
    %cst_17 = arith.constant 3.200000e+01 : f32
    %48 = vector.broadcast %cst_17 : f32 to vector<8x8xf32>
    %49 = arith.mulf %48, %47 : vector<8x8xf32>
    %50 = math.exp %49 : vector<8x8xf32>
    %51 = arith.select %44, %50, %45 : vector<8x8xi1>, vector<8x8xf32>
    %52 = arith.select %44, %32, %45 : vector<8x8xi1>, vector<8x8xf32>
    %cst_18 = arith.constant 1.000000e+00 : f32
    %53 = vector.broadcast %cst_18 : f32 to vector<8x8xf32>
    %54 = arith.addf %53, %52 : vector<8x8xf32>
    %55 = arith.mulf %54, %54 : vector<8x8xf32>
    %cst_19 = arith.constant 1.000000e+00 : f32
    %56 = vector.broadcast %cst_19 : f32 to vector<8x8xf32>
    %57 = arith.addf %56, %51 : vector<8x8xf32>
    %58 = math.log %57 : vector<8x8xf32>
    %59 = arith.mulf %55, %58 : vector<8x8xf32>
    %60 = vector.shape_cast %59 : vector<8x8xf32> to vector<1x8x8xf32>
    %cst_20 = arith.constant dense<0.000000e+00> : vector<1xf32>
    %61 = vector.multi_reduction <add>, %60, %cst_20 [1, 2] : vector<1x8x8xf32> to vector<1xf32>
    %62 = vector.shape_cast %61 : vector<1xf32> to vector<1x1x1xf32>
    %63 = vector.extract %62[0, 0, 0] : f32 from vector<1x1x1xf32>
    %cst_21 = arith.constant 1.250000e-01 : f32
    %64 = arith.mulf %63, %cst_21 : f32
    %65 = vector.broadcast %64 : f32 to vector<8x128xf32>
    %c0_22 = arith.constant 0 : index
    %c0_23 = arith.constant 0 : index
    %66 = vector.load %arg5[%c0_22, %c0_23] : memref<8x128xf32, #tpu.memory_space<vmem>>, vector<8x128xf32>
    tpu.vector_store %arg5[%c0_22, %c0_23], %65 {strides = array<i32>} : memref<8x128xf32, #tpu.memory_space<vmem>>, vector<8x128xf32>,
    return
  }
  func.func @transform_0(%arg0: i32) -> (i32, i32) {
    %c0_i32 = arith.constant 0 : i32
    %c0_i32_0 = arith.constant 0 : i32
    return %arg0, %c0_i32 : i32, i32
  }
  func.func @transform_1(%arg0: i32) -> (i32, i32) {
    %c0_i32 = arith.constant 0 : i32
    %c0_i32_0 = arith.constant 0 : i32
    %c0_i32_1 = arith.constant 0 : i32
    return %c0_i32, %c0_i32_0 : i32, i32
  }
  func.func @transform_2(%arg0: i32) -> (i32, i32) {
    %c0_i32 = arith.constant 0 : i32
    %c0_i32_0 = arith.constant 0 : i32
    return %arg0, %c0_i32 : i32, i32
  }
  func.func @transform_3(%arg0: i32) -> (i32, i32) {
    %c0_i32 = arith.constant 0 : i32
    %c0_i32_0 = arith.constant 0 : i32
    %c0_i32_1 = arith.constant 0 : i32
    return %c0_i32, %c0_i32_0 : i32, i32
  }
  func.func @transform_4(%arg0: i32) -> (i32, i32) {
    %c0_i32 = arith.constant 0 : i32
    %c0_i32_0 = arith.constant 0 : i32
    return %arg0, %c0_i32 : i32, i32
  }
}

</mosaic_0001>

<bundles_post_ra>
// kernel: tpu_custom_call.1
= control target key start
LH: loop header
LB: loop body
LE: loop exit
PB: predicated region body
PF: predicated region fallthrough
CT: control target
= control target key end

     0   :  { %9 = vsyncpa [#allocation3], 0  ;;  %s320_s0 = inlined_call_operand.vmem [shape: f32[8,128], index: 0, kind: input, shape index: {}]   ;;  %s321_s1 = inlined_call_operand.hbm [shape: f32[8,128], index: 1, kind: input, shape index: {}]   ;;  %s322_s2 = inlined_call_operand.vmem [shape: s32[8,1], index: 2, kind: input, shape index: {}]   ;;  %s323_s3 = inlined_call_operand.vmem [shape: s32[1,8], index: 3, kind: input, shape index: {}]   ;;  %s324_s4 = inlined_call_operand.hbm [shape: f32[8,128], index: 4, kind: output, shape index: {}]  }
   0x1   :  { %10 = vsyncpa [#allocation4], 0  ;;  %s257_s15 = smov [#allocation2]   ;;  %s209_s19 = scalar_lea.hbm %s321_s1, 128 }
   0x2   :  { %s19_s16 = sshll.u32 %s257_s15, 4  ;;  %p210_p0 = scmp.ne.s32.totalorder %s321_s1, %s209_s19  ;;  %s20_s16 = int_to_ptr.vmem [resolvable:$true] %s19_s16 }
   0x3   :  { %p213_p1 = scmp.lt.u32.totalorder %s209_s19, %s321_s1 }
   0x5   :  { %p215_p2 = pnand %p213_p1, %p210_p0 }
   0x7   :  { %218 = shalt.err (!%p215_p2)
}
   0x8   :  { %s219_s24 = scalar_lea.vmem %s20_s16, 128  ;;  %p224_p4 = scmp.lt.s32.totalorder %s20_s16, %s20_s16 }
   0x9   :  { %p220_p3 = scmp.ne.s32.totalorder %s20_s16, %s219_s24  ;;  %p225_p5 = scmp.lt.s32.totalorder %s219_s24, %s219_s24 }
   0xb   :  { %p226_p6 = por %p225_p5, %p224_p4 }
   0xd   :  { %p227_p7 = pnand %p226_p6, %p220_p3 }
   0xf   :  { %230 = shalt.err (!%p227_p7)
}
  0x10   :  { %22 = dma.hbm_to_vmem [thread:$0]  %s321_s1, 128, %s20_s16, [#allocation3]  }
  0x11   :  { %253 = dma.done.wait [#allocation3], 128  }
  0x12   :  { %254 = vsyncadd [#allocation3], 4294967168  ;;  %v42_v0 = vld [vmem:[#allocation2] sm:$0xff]  ;;  %v258_v4 = vmov 0.0   ;;  %vm259_vm0 = vmmov 0   ;;  %v260_v6 = vmov 0   ;;  %v127_v30 = vlaneseq }
  0x13   :  { %v30_v1 = vld [vmem:[%s320_s0] sm:$0xff]  ;;  %v43_v2 = vmul.f32 %v42_v0, %v42_v0  ;;  %187 = vmatprep.subr.mxu0 %v258_v4  ;;  %189 = vmatprep.mubr.msk.f32.mxu0 %vm259_vm0, %v258_v4  ;;  %vm155_vm4 = vcmask 64512  }
  0x14   :  { %v31_v3 = vmul.f32 %v30_v1, %v30_v1  ;;  %v124_v5 = vld [vmem:[%s322_s2] sm:$0xff]  ;;  %199 = vset.pattern.permute.xlu1 %v260_v6  ;;  %200 = vset.pattern.permute.xlu0 %v260_v6  ;;  %v128_v31 = vshrl.u32 %v127_v30, 7  ;;  %v132_v32 = vand.u32 127, %v127_v30  ;;  %s261_s2 = smov [#allocation5]  }
  0x15   :  { %44 = vadd.xlane.f32.xlu0 %v43_v2  ;;  %134 = vperm.xlu1 %199, %v124_v5   ;;  %v184_v33 = vld [vmem:[%s323_s3] ss:$0 sm:$0xff]  ;;  %s175_s3 = sshll.u32 %s261_s2, 4  ;;  %s176_s3 = int_to_ptr.vmem [resolvable:$true] %s175_s3 }
  0x16   :  { %vm141_vm1 = vcmp.ne.s32.totalorder %v128_v31, %v132_v32  ;;  %s231_s7 = scalar_lea.vmem %s176_s3, 128  ;;  %p236_p9 = scmp.lt.s32.totalorder %s176_s3, %s176_s3 }
  0x17   :  { %p232_p8 = scmp.ne.s32.totalorder %s176_s3, %s231_s7  ;;  %p237_p10 = scmp.lt.s32.totalorder %s231_s7, %s231_s7 }
  0x19   :  { %32 = vadd.xlane.f32.xlu0 %v31_v3  ;;  %p238_p11 = por %p237_p10, %p236_p9 }
  0x1b   :  { %p239_p12 = pnand %p238_p11, %p232_p8 }
  0x94   :  { %v135_v34 = vpop.permute.xlu1 %134 }
  0x95   :  { %vm140_vm2 = vcmp.eq.s32.totalorder %v135_v34, %v184_v33 }
  0x96   :  { %vm142_vm3 = vmand %vm140_vm2, %vm141_vm1 }
  0xa2   :  { %v45_v7 = vpop.xlane.xlu0 %44 }
  0xa3   :  { %v46_v8 = vmax.f32 %v45_v7, 1e-24 }
  0xa5   :  { %201 = vrsqrt.f32 %v46_v8  ;;  %v48_v11 = vmul.f32 0.5, %v46_v8 }
  0xa6   :  { %v33_v9 = vpop.xlane.xlu0 %32 }
  0xa7   :  { %v34_v10 = vmax.f32 %v33_v9, 1e-24 }
  0xa9   :  { %203 = vrsqrt.f32 %v34_v10  ;;  %v36_v14 = vmul.f32 0.5, %v34_v10 }
  0xaf   :  { %v202_v12 = vpop.eup %201 }
  0xb0   :  { %v49_v13 = vmul.f32 %v202_v12, %v48_v11 }
  0xb2   :  { %v50_v15 = vmul.f32 %v202_v12, %v49_v13 }
  0xb3   :  { %v204_v16 = vpop.eup %203 }
  0xb4   :  { %v37_v17 = vmul.f32 %v204_v16, %v36_v14  ;;  %v51_v18 = vsub.f32 1.5, %v50_v15 }
  0xb6   :  { %v38_v19 = vmul.f32 %v204_v16, %v37_v17  ;;  %v52_v20 = vmul.f32 %v202_v12, %v51_v18 }
  0xb8   :  { %v39_v21 = vsub.f32 1.5, %v38_v19  ;;  %v53_v22 = vmul.f32 %v52_v20, %v42_v0 }
  0xba   :  { %188 = vmatpush3.xpose.msra.mxu0 %v53_v22  ;;  %v40_v23 = vmul.f32 %v204_v16, %v39_v21 }
  0xbc   :  { %v41_v24 = vmul.f32 %v40_v23, %v30_v1 }
  0xbe   :  { %190 = vmatmul.mubr.f32.vlgmr.msra.gmra.mrb[0].mxu0 %v41_v24 }
 0x191   :  { %v120_v25 = vpop.f32.mrb[0].mxu0 }
 0x192   :  { %v143_v26 = vadd.f32 0.1, %v120_v25  ;;  %v191_v27 = vpop.f32.mrb[1].mxu0  ;;  %v148_v38 = vsel %vm142_vm3, %v120_v25, 0.0 }
 0x193   :  { %v149_v39 = vadd.f32 1.0, %v148_v38 }
 0x194   :  { %v144_v28 = vmul.f32 32.0, %v143_v26 }
 0x195   :  { %v150_v41 = vmul.f32 %v149_v39, %v149_v39 }
 0x196   :  { %v145_v29 = vmul.f32 1.442695, %v144_v28 }
 0x198   :  { %205 = vpow2.f32 %v145_v29 }
 0x1a2   :  { %v206_v35 = vpop.eup %205 }
 0x1a3   :  { %v147_v36 = vsel %vm142_vm3, %v206_v35, 0.0 }
 0x1a4   :  { %v151_v37 = vadd.f32 1.0, %v147_v36 }
 0x1a6   :  { %207 = vlog2.f32 %v151_v37 }
 0x1b0   :  { %v208_v40 = vpop.eup %207 }
 0x1b1   :  { %v153_v42 = vmul.f32 0.6931472, %v208_v40 }
 0x1b3   :  { %v154_v43 = vmul.f32 %v153_v42, %v150_v41 }
 0x1b5   :  { %v156_v44 = vsel %vm155_vm4, %v154_v43, 0.0 }
 0x1b6   :  { %157 = vadd.xlane.f32.xlu1 %v156_v44 }
 0x243   :  { %v158_v45 = vpop.xlane.xlu1 %157 }
 0x244   :  { %v159_v46 = vrot.slane %v158_v45, 4 }
 0x246   :  { %v160_v47 = vadd.f32 %v159_v46, %v158_v45 }
 0x248   :  { %v161_v48 = vrot.slane %v160_v47, 2 }
 0x24a   :  { %v162_v49 = vadd.f32 %v161_v48, %v160_v47 }
 0x24c   :  { %v163_v50 = vrot.slane %v162_v49, 1 }
 0x24e   :  { %v164_v51 = vadd.f32 %v163_v50, %v162_v49 }
 0x250   :  { %192 = vpush %v164_v51 }
 0x281   :  { %s193_s5 = spop %192 }
 0x282   :  { %s166_s6 = smul.f32 0.125, %s193_s5 }
 0x284   :  { %v167_v52 = vstv %s166_s6 }
 0x285   :  { %168 = vst [vmem:[#allocation5] sm:$0xff] %v167_v52 }
 0x286   :  { %242 = shalt.err (!%p239_p12)
}
 0x287   :  { %s243_s10 = scalar_lea.hbm %s324_s4, 128 }
 0x288   :  { %p244_p13 = scmp.ne.s32.totalorder %s324_s4, %s243_s10  ;;  %p247_p0 = scmp.lt.u32.totalorder %s243_s10, %s324_s4 }
 0x28a   :  { %p249_p1 = pnand %p247_p0, %p244_p13 }
 0x28c   :  { %252 = shalt.err (!%p249_p1)
}
 0x28d   :  { %178 = dma.vmem_to_hbm [thread:$0]  %s176_s3, 128, %s324_s4, [#allocation4]  }
 0x28e   :  { %255 = dma.done.wait [#allocation4], 128  }
 0x28f   :  { %256 = vsyncadd [#allocation4], 4294967168 }
 0x290   :  { %182 = vsyncpa [#allocation3], 1 }
 0x291   :  { %183 = vsyncpa [#allocation4], 1 }

</bundles_post_ra>
